<compile_context>
chip_gen: v5e
topology: v5e:2x2
jax: 0.10.0
libtpu: 0.0.40
codegen_flags: <defaults>
</compile_context>

<pallas_src>
import jax
import jax.numpy as jnp
from jax.experimental import pallas as pl
from jax.experimental.pallas import tpu as pltpu

_EPS = 1e-5                      # BatchNorm1d default eps
_LEAK = 0.2                      # LeakyReLU negative slope
_LANE = 128                      # lane width / output-channel padding target
_VMEM_LIMIT = 32 * 1024 * 1024   # keep <= half of v7x's 64 MiB physical VMEM


def _round_up(x, m):
    return (x + m - 1) // m * m


def _choose_tile(n, target=512):
    """Row tile: multiple of 32, <= target, and >=2 grid steps when the whole
    problem would otherwise fit in a single tile (keep v7x's two TCs busy)."""
    n32 = _round_up(n, 32)
    t = min(target, n32)
    if t == n32 and n32 >= 64:
        t = _round_up(n32 // 2, 32)
    return max(t, 32)


# ----------------------------------------------------------------- pool kernel
def _pool_mean_kernel(slab_ref, avg_ref, o_ref):
    # Lane-dense [tile, 7C] slab @ constant [7C, C] block-diagonal 1/7 matrix.
    # Column group {7a..7a+6} of the slab is exactly channel a's 7 pooled rows
    # under torch's .view(n, C, 7), so this reproduces .mean(dim=2) exactly.
    o_ref[...] = jnp.dot(slab_ref[...], avg_ref[...],
                         preferred_element_type=jnp.float32).astype(o_ref.dtype)


def pool_mean(x, pool_orders, *, tile):
    n = (x.shape[0] + 6) // 4
    c = x.shape[1]
    n_pad = _round_up(n, tile)
    # TODO(synk): move this pooling row-gather in-kernel (same limitation as the
    # 1-ring gather); stays as XLA glue for now.
    slab = jnp.take(x, pool_orders[: n * 7], axis=0).reshape(n, 7 * c)
    slab = jnp.pad(slab, ((0, n_pad - n), (0, 0)))        # zero rows -> zero pooled rows
    avg = (jnp.repeat(jnp.eye(c, dtype=jnp.float32), 7, axis=0) / 7.0).astype(x.dtype)
    pooled = pl.pallas_call(
        _pool_mean_kernel,
        out_shape=jax.ShapeDtypeStruct((n_pad, c), x.dtype),
        grid=(n_pad // tile,),
        in_specs=[pl.BlockSpec((tile, 7 * c), lambda i: (i, 0)),
                  pl.BlockSpec((7 * c, c), lambda i: (0, 0))],
        out_specs=pl.BlockSpec((tile, c), lambda i: (i, 0)),
        compiler_params=pltpu.CompilerParams(
            dimension_semantics=("parallel",),
            vmem_limit_bytes=_VMEM_LIMIT),
    )(slab, avg)
    return pooled[:n]


# ------------------------------------------ conv pass 1: matmul + BN statistics
def _matmul_stats_kernel(mat_ref, w_ref, y_ref, stats_ref):
    # mat: [tile, 7*in_ch], w: [7*in_ch, OCP] -> MXU, f32 accumulate.
    # No bias add: the per-channel bias cancels exactly under batch-stat BN.
    y = jnp.dot(mat_ref[...], w_ref[...], preferred_element_type=jnp.float32)
    # y written back in the compute dtype (bf16 fast path) -> halves the HBM
    # round-trip; BN stats are taken from the exact f32 accumulation below.
    y_ref[...] = y.astype(y_ref.dtype)
    # Packed per-tile partials [1, 2, OCP]: row 0 = sum, row 1 = sum of squares.
    # The tiny cross-tile reduce happens in the wrapper so the grid axis stays
    # fully "parallel" (shards across v7x's two TensorCores).
    stats_ref[...] = jnp.concatenate(
        [jnp.sum(y, axis=0, keepdims=True),
         jnp.sum(y * y, axis=0, keepdims=True)], axis=0)[None]


def _matmul_with_stats(mat, w, *, tile):
    n_pad, k = mat.shape
    ocp = w.shape[1]
    num_tiles = n_pad // tile
    # NOTE(v6e): pass 1 is DMA-bound with tiny K; `pipeline_mode=pl.Buffered(3)`
    # on the `mat` stream and a larger vmem_limit are further (untested-here) knobs.
    return pl.pallas_call(
        _matmul_stats_kernel,
        out_shape=(
            jax.ShapeDtypeStruct((n_pad, ocp), mat.dtype),           # y, compute dtype
            jax.ShapeDtypeStruct((num_tiles, 2, ocp), jnp.float32),  # [sum; sumsq]
        ),
        grid=(num_tiles,),
        in_specs=[
            pl.BlockSpec((tile, k), lambda i: (i, 0)),
            pl.BlockSpec((k, ocp), lambda i: (0, 0)),
        ],
        out_specs=(
            pl.BlockSpec((tile, ocp), lambda i: (i, 0)),
            pl.BlockSpec((1, 2, ocp), lambda i: (i, 0, 0)),
        ),
        compiler_params=pltpu.CompilerParams(
            dimension_semantics=("parallel",),
            vmem_limit_bytes=_VMEM_LIMIT),
    )(mat, w)


# ------------------------------------------- conv pass 2: normalize + LeakyReLU
def _bn_lrelu_kernel(y_ref, scale_ref, shift_ref, o_ref):
    # f32 FMA (v5e has no bf16 VPU) + LeakyReLU via maximum().
    z = y_ref[...].astype(jnp.float32) * scale_ref[...] + shift_ref[...]
    o_ref[...] = jnp.maximum(z, _LEAK * z).astype(o_ref.dtype)


def _bn_lrelu(y, scale, shift, *, tile, out_dtype):
    n_pad, ocp = y.shape
    return pl.pallas_call(
        _bn_lrelu_kernel,
        out_shape=jax.ShapeDtypeStruct((n_pad, ocp), out_dtype),
        grid=(n_pad // tile,),
        in_specs=[
            pl.BlockSpec((tile, ocp), lambda i: (i, 0)),
            pl.BlockSpec((1, ocp), lambda i: (0, 0)),
            pl.BlockSpec((1, ocp), lambda i: (0, 0)),
        ],
        out_specs=pl.BlockSpec((tile, ocp), lambda i: (i, 0)),
        compiler_params=pltpu.CompilerParams(
            dimension_semantics=("parallel",),
            vmem_limit_bytes=_VMEM_LIMIT),
    )(y, scale, shift)


# ---------------------------------------------------- one conv+BN+LReLU stage
def conv_bn_lrelu(x, neigh_orders, w_p, gamma, beta, *, tile, out_dtype):
    n, in_ch = x.shape
    k = 7 * in_ch
    ocp = w_p.shape[1]              # lane-dense (>=128) padded output channels
    out_ch = gamma.shape[0]
    compute_dtype = w_p.dtype
    n_pad = _round_up(n, tile)

    # TODO(synk): move this 1-ring gather in-kernel (manual DMA gather / scalar-
    # prefetch index maps) to avoid materializing the 7x-expanded matrix in HBM
    # at large mesh levels; Pallas TPU has no general in-VMEM row-gather lowering,
    # so it stays XLA glue (gathered in the compute dtype to halve its bytes).
    mat = jnp.take(x.astype(compute_dtype), neigh_orders, axis=0).reshape(n, k)
    mat = jnp.pad(mat, ((0, n_pad - n), (0, 0)))   # zero rows: no stat pollution

    y, stats = _matmul_with_stats(mat, w_p, tile=tile)

    # Tiny [num_tiles, 2, OCP] reduction + scale/shift precompute (wrapper-side).
    s = jnp.sum(stats[:, 0, :], axis=0)
    ss = jnp.sum(stats[:, 1, :], axis=0)
    mean = s / n
    # Single-pass biased batch variance (f32, clamped). Fine for unit-scale
    # activations; use a Welford/Chan combine if |mean| >> std ever holds.
    var = jnp.maximum(ss / n - mean * mean, 0.0)
    gamma_p = jnp.pad(gamma, (0, ocp - out_ch))
    beta_p = jnp.pad(beta, (0, ocp - out_ch))
    scale = gamma_p * jax.lax.rsqrt(var + _EPS)
    shift = beta_p - mean * scale

    out = _bn_lrelu(y, scale.reshape(1, ocp), shift.reshape(1, ocp),
                    tile=tile, out_dtype=out_dtype)
    return out[:n, :out_ch]


# ---------------------------------------------------------- one-time param prep
def prepare_params(params, compute_dtype=jnp.bfloat16):
    """Pad/cast the Linear weights once at setup (hoisted out of the forward path).
    Linear biases b1/b2 are intentionally omitted: they cancel exactly under
    batch-statistic BatchNorm (track_running_stats=False)."""
    def prep_w(w):
        out_ch = w.shape[1]
        ocp = _round_up(out_ch, _LANE)
        return jnp.pad(w, ((0, 0), (0, ocp - out_ch))).astype(compute_dtype)
    return dict(
        w1p=prep_w(params["w1"]), w2p=prep_w(params["w2"]),
        g1=params["g1"].reshape(-1).astype(jnp.float32),
        beta1=params["beta1"].reshape(-1).astype(jnp.float32),
        g2=params["g2"].reshape(-1).astype(jnp.float32),
        beta2=params["beta2"].reshape(-1).astype(jnp.float32),
    )


# ------------------------------------------------------------------ full block
def down_block_forward(x, prepared, neigh_orders, pool_neigh_orders=None, first=False):
    compute_dtype = prepared["w1p"].dtype
    if not first:
        n = (x.shape[0] + 6) // 4
        tile = _choose_tile(n)
        x = pool_mean(x, pool_neigh_orders, tile=tile)
    else:
        n = x.shape[0]
        tile = _choose_tile(n)
    h = conv_bn_lrelu(x, neigh_orders, prepared["w1p"], prepared["g1"], prepared["beta1"],
                      tile=tile, out_dtype=compute_dtype)
    out = conv_bn_lrelu(h, neigh_orders, prepared["w2p"], prepared["g2"], prepared["beta2"],
                        tile=tile, out_dtype=jnp.float32)
    return out


# ---------------------------------------------------------------- pure-JAX ref
def _ref_conv_bn_lrelu(x, neigh, w, b, gamma, beta):
    n, c = x.shape
    mat = jnp.take(x, neigh, axis=0).reshape(n, 7 * c)
    y = mat @ w + b
    mean = y.mean(0, keepdims=True)
    var = ((y - mean) ** 2).mean(0, keepdims=True)
    y = (y - mean) / jnp.sqrt(var + _EPS) * gamma + beta
    return jnp.where(y >= 0.0, y, _LEAK * y)


def _ref_forward(x, params, neigh_orders, pool_orders):
    n = (x.shape[0] + 6) // 4
    c = x.shape[1]
    g = jnp.take(x, pool_orders[: n * 7], axis=0).reshape(n, c, 7).mean(-1)
    h = _ref_conv_bn_lrelu(g, neigh_orders, params["w1"], params["b1"],
                           params["g1"], params["beta1"])
    return _ref_conv_bn_lrelu(h, neigh_orders, params["w2"], params["b2"],
                              params["g2"], params["beta2"])


if __name__ == "__main__":
    # icosahedral mesh sizes: 162 fine vertices -> 42 coarse vertices
    N_in, in_ch, out_ch = 162, 4, 8
    num_nodes = (N_in + 6) // 4  # 42

    key = jax.random.PRNGKey(0)
    ks = jax.random.split(key, 7)

    x = jax.random.normal(ks[0], (N_in, in_ch), jnp.float32)
    pool_orders = jax.random.randint(ks[1], (num_nodes * 7,), 0, N_in)
    neigh_orders = jax.random.randint(ks[2], (num_nodes * 7,), 0, num_nodes)

    # nn.Linear(7*in_ch, out_ch) weights, stored pre-transposed as [7*in_ch, out_ch]
    w1 = jax.random.normal(ks[3], (7 * in_ch, out_ch), jnp.float32) / jnp.sqrt(7.0 * in_ch)
    b1 = jax.random.normal(ks[4], (1, out_ch), jnp.float32) * 0.01
    w2 = jax.random.normal(ks[5], (7 * out_ch, out_ch), jnp.float32) / jnp.sqrt(7.0 * out_ch)
    b2 = jax.random.normal(ks[6], (1, out_ch), jnp.float32) * 0.01

    params = dict(
        w1=w1, b1=b1, g1=jnp.ones((1, out_ch), jnp.float32), beta1=jnp.zeros((1, out_ch), jnp.float32),
        w2=w2, b2=b2, g2=jnp.ones((1, out_ch), jnp.float32), beta2=jnp.zeros((1, out_ch), jnp.float32),
    )

    ref = _ref_forward(x, params, neigh_orders, pool_orders)

    fwd = jax.jit(down_block_forward, static_argnames=("first",))

    # f32 compute path: tight check of kernel logic against the PyTorch-faithful ref
    # (y intermediate stays f32 here, so only MXU/accumulation differences remain).
    prep_f32 = prepare_params(params, compute_dtype=jnp.float32)
    out_f32 = jax.block_until_ready(
        fwd(x, prep_f32, neigh_orders, pool_orders, first=False))
    assert out_f32.shape == (num_nodes, out_ch)
    assert jnp.allclose(out_f32, ref, atol=1e-2, rtol=1e-2)

    # bf16 fast path: looser tolerance — inputs, 1-ring matrix AND the y
    # intermediate are bf16 now (BN stats still exact f32).
    prep_bf16 = prepare_params(params, compute_dtype=jnp.bfloat16)
    out_bf16 = jax.block_until_ready(
        fwd(x, prep_bf16, neigh_orders, pool_orders, first=False))
    assert out_bf16.shape == (num_nodes, out_ch)
    assert jnp.allclose(out_bf16, ref, atol=1e-1, rtol=1e-1)

    print("KERNEL_OK")
</pallas_src>

<mosaic_0001>
module attributes {stable_mosaic.version = 11 : i64} {
  func.func @_pool_mean_kernel(%arg0: i32, %arg1: memref<32x28xf32, #tpu.memory_space<vmem>>, %arg2: memref<28x4xf32, #tpu.memory_space<vmem>>, %arg3: memref<32x4xf32, #tpu.memory_space<vmem>>) attributes {dimension_semantics = [#tpu.dimension_semantics<parallel>], iteration_bounds = array<i64: 2>, scalar_prefetch = 0 : i64, scratch_operands = 0 : i64, tpu.core_type = #tpu.core_type<tc>, window_params = [{transform_indices = @transform_0, window_bounds = array<i64: 32, 28>}, {pipeline_mode = #tpu.pipeline_mode<synchronous>, transform_indices = @transform_1, window_bounds = array<i64: 28, 4>}, {transform_indices = @transform_2, window_bounds = array<i64: 32, 4>}]} {
    %c0 = arith.constant 0 : index
    %c0_0 = arith.constant 0 : index
    %0 = vector.load %arg1[%c0, %c0_0] : memref<32x28xf32, #tpu.memory_space<vmem>>, vector<32x28xf32>
    %c0_1 = arith.constant 0 : index
    %c0_2 = arith.constant 0 : index
    %1 = vector.load %arg2[%c0_1, %c0_2] : memref<28x4xf32, #tpu.memory_space<vmem>>, vector<28x4xf32>
    %cst = arith.constant dense<0.000000e+00> : vector<32x4xf32>
    %2 = tpu.matmul %0, %1, %cst {dimension_numbers = #tpu.dot_dimension_numbers<[1], [0], [0], [1], [0, 0, 1, 1], [], []>} : vector<32x28xf32>, vector<28x4xf32>, vector<32x4xf32> -> vector<32x4xf32>
    %c0_3 = arith.constant 0 : index
    %c0_4 = arith.constant 0 : index
    %3 = vector.load %arg3[%c0_3, %c0_4] : memref<32x4xf32, #tpu.memory_space<vmem>>, vector<32x4xf32>
    tpu.vector_store %arg3[%c0_3, %c0_4], %2 {strides = array<i32>} : memref<32x4xf32, #tpu.memory_space<vmem>>, vector<32x4xf32>,
    return
  }
  func.func @transform_0(%arg0: i32) -> (i32, i32) {
    %c0_i32 = arith.constant 0 : i32
    %c0_i32_0 = arith.constant 0 : i32
    return %arg0, %c0_i32 : i32, i32
  }
  func.func @transform_1(%arg0: i32) -> (i32, i32) {
    %c0_i32 = arith.constant 0 : i32
    %c0_i32_0 = arith.constant 0 : i32
    %c0_i32_1 = arith.constant 0 : i32
    return %c0_i32, %c0_i32_0 : i32, i32
  }
  func.func @transform_2(%arg0: i32) -> (i32, i32) {
    %c0_i32 = arith.constant 0 : i32
    %c0_i32_0 = arith.constant 0 : i32
    return %arg0, %c0_i32 : i32, i32
  }
}

module attributes {stable_mosaic.version = 11 : i64} {
  func.func @_matmul_stats_kernel(%arg0: i32, %arg1: memref<32x28xf32, #tpu.memory_space<vmem>>, %arg2: memref<28x128xf32, #tpu.memory_space<vmem>>, %arg3: memref<32x128xf32, #tpu.memory_space<vmem>>, %arg4: memref<1x2x128xf32, #tpu.memory_space<vmem>>) attributes {dimension_semantics = [#tpu.dimension_semantics<parallel>], iteration_bounds = array<i64: 2>, scalar_prefetch = 0 : i64, scratch_operands = 0 : i64, tpu.core_type = #tpu.core_type<tc>, window_params = [{transform_indices = @transform_0, window_bounds = array<i64: 32, 28>}, {pipeline_mode = #tpu.pipeline_mode<synchronous>, transform_indices = @transform_1, window_bounds = array<i64: 28, 128>}, {transform_indices = @transform_2, window_bounds = array<i64: 32, 128>}, {transform_indices = @transform_3, window_bounds = array<i64: 1, 2, 128>}]} {
    %c0 = arith.constant 0 : index
    %c0_0 = arith.constant 0 : index
    %0 = vector.load %arg1[%c0, %c0_0] : memref<32x28xf32, #tpu.memory_space<vmem>>, vector<32x28xf32>
    %c0_1 = arith.constant 0 : index
    %c0_2 = arith.constant 0 : index
    %1 = vector.load %arg2[%c0_1, %c0_2] : memref<28x128xf32, #tpu.memory_space<vmem>>, vector<28x128xf32>
    %cst = arith.constant dense<0.000000e+00> : vector<32x128xf32>
    %2 = tpu.matmul %0, %1, %cst {dimension_numbers = #tpu.dot_dimension_numbers<[1], [0], [0], [1], [0, 0, 1, 1], [], []>} : vector<32x28xf32>, vector<28x128xf32>, vector<32x128xf32> -> vector<32x128xf32>
    %c0_3 = arith.constant 0 : index
    %c0_4 = arith.constant 0 : index
    %3 = vector.load %arg3[%c0_3, %c0_4] : memref<32x128xf32, #tpu.memory_space<vmem>>, vector<32x128xf32>
    tpu.vector_store %arg3[%c0_3, %c0_4], %2 {strides = array<i32>} : memref<32x128xf32, #tpu.memory_space<vmem>>, vector<32x128xf32>,
    %cst_5 = arith.constant dense<0.000000e+00> : vector<128xf32>
    %4 = vector.multi_reduction <add>, %2, %cst_5 [0] : vector<32x128xf32> to vector<128xf32>
    %5 = vector.shape_cast %4 : vector<128xf32> to vector<1x128xf32>
    %6 = arith.mulf %2, %2 : vector<32x128xf32>
    %cst_6 = arith.constant dense<0.000000e+00> : vector<128xf32>
    %7 = vector.multi_reduction <add>, %6, %cst_6 [0] : vector<32x128xf32> to vector<128xf32>
    %8 = vector.shape_cast %7 : vector<128xf32> to vector<1x128xf32>
    %9 = tpu.concatenate %5, %8 in 0 : vector<1x128xf32>, vector<1x128xf32> -> vector<2x128xf32>
    %10 = vector.shape_cast %9 : vector<2x128xf32> to vector<1x2x128xf32>
    %c0_7 = arith.constant 0 : index
    %c0_8 = arith.constant 0 : index
    %c0_9 = arith.constant 0 : index
    %11 = vector.load %arg4[%c0_7, %c0_8, %c0_9] : memref<1x2x128xf32, #tpu.memory_space<vmem>>, vector<1x2x128xf32>
    tpu.vector_store %arg4[%c0_7, %c0_8, %c0_9], %10 {strides = array<i32>} : memref<1x2x128xf32, #tpu.memory_space<vmem>>, vector<1x2x128xf32>,
    return
  }
  func.func @transform_0(%arg0: i32) -> (i32, i32) {
    %c0_i32 = arith.constant 0 : i32
    %c0_i32_0 = arith.constant 0 : i32
    return %arg0, %c0_i32 : i32, i32
  }
  func.func @transform_1(%arg0: i32) -> (i32, i32) {
    %c0_i32 = arith.constant 0 : i32
    %c0_i32_0 = arith.constant 0 : i32
    %c0_i32_1 = arith.constant 0 : i32
    return %c0_i32, %c0_i32_0 : i32, i32
  }
  func.func @transform_2(%arg0: i32) -> (i32, i32) {
    %c0_i32 = arith.constant 0 : i32
    %c0_i32_0 = arith.constant 0 : i32
    return %arg0, %c0_i32 : i32, i32
  }
  func.func @transform_3(%arg0: i32) -> (i32, i32, i32) {
    %c0_i32 = arith.constant 0 : i32
    %c0_i32_0 = arith.constant 0 : i32
    %c0_i32_1 = arith.constant 0 : i32
    return %arg0, %c0_i32, %c0_i32_0 : i32, i32, i32
  }
}

module attributes {stable_mosaic.version = 11 : i64} {
  func.func @_bn_lrelu_kernel(%arg0: i32, %arg1: memref<32x128xf32, #tpu.memory_space<vmem>>, %arg2: memref<1x128xf32, #tpu.memory_space<vmem>>, %arg3: memref<1x128xf32, #tpu.memory_space<vmem>>, %arg4: memref<32x128xf32, #tpu.memory_space<vmem>>) attributes {dimension_semantics = [#tpu.dimension_semantics<parallel>], iteration_bounds = array<i64: 2>, scalar_prefetch = 0 : i64, scratch_operands = 0 : i64, tpu.core_type = #tpu.core_type<tc>, window_params = [{transform_indices = @transform_0, window_bounds = array<i64: 32, 128>}, {pipeline_mode = #tpu.pipeline_mode<synchronous>, transform_indices = @transform_1, window_bounds = array<i64: 1, 128>}, {pipeline_mode = #tpu.pipeline_mode<synchronous>, transform_indices = @transform_2, window_bounds = array<i64: 1, 128>}, {transform_indices = @transform_3, window_bounds = array<i64: 32, 128>}]} {
    %c0 = arith.constant 0 : index
    %c0_0 = arith.constant 0 : index
    %0 = vector.load %arg1[%c0, %c0_0] : memref<32x128xf32, #tpu.memory_space<vmem>>, vector<32x128xf32>
    %c0_1 = arith.constant 0 : index
    %c0_2 = arith.constant 0 : index
    %1 = vector.load %arg2[%c0_1, %c0_2] : memref<1x128xf32, #tpu.memory_space<vmem>>, vector<1x128xf32>
    %2 = vector.broadcast %1 : vector<1x128xf32> to vector<32x128xf32>
    %3 = arith.mulf %0, %2 : vector<32x128xf32>
    %c0_3 = arith.constant 0 : index
    %c0_4 = arith.constant 0 : index
    %4 = vector.load %arg3[%c0_3, %c0_4] : memref<1x128xf32, #tpu.memory_space<vmem>>, vector<1x128xf32>
    %5 = vector.broadcast %4 : vector<1x128xf32> to vector<32x128xf32>
    %6 = arith.addf %3, %5 : vector<32x128xf32>
    %cst = arith.constant 2.000000e-01 : f32
    %7 = vector.broadcast %cst : f32 to vector<32x128xf32>
    %8 = arith.mulf %7, %6 : vector<32x128xf32>
    %9 = arith.maximumf %6, %8 : vector<32x128xf32>
    %c0_5 = arith.constant 0 : index
    %c0_6 = arith.constant 0 : index
    %10 = vector.load %arg4[%c0_5, %c0_6] : memref<32x128xf32, #tpu.memory_space<vmem>>, vector<32x128xf32>
    tpu.vector_store %arg4[%c0_5, %c0_6], %9 {strides = array<i32>} : memref<32x128xf32, #tpu.memory_space<vmem>>, vector<32x128xf32>,
    return
  }
  func.func @transform_0(%arg0: i32) -> (i32, i32) {
    %c0_i32 = arith.constant 0 : i32
    %c0_i32_0 = arith.constant 0 : i32
    return %arg0, %c0_i32 : i32, i32
  }
  func.func @transform_1(%arg0: i32) -> (i32, i32) {
    %c0_i32 = arith.constant 0 : i32
    %c0_i32_0 = arith.constant 0 : i32
    %c0_i32_1 = arith.constant 0 : i32
    return %c0_i32, %c0_i32_0 : i32, i32
  }
  func.func @transform_2(%arg0: i32) -> (i32, i32) {
    %c0_i32 = arith.constant 0 : i32
    %c0_i32_0 = arith.constant 0 : i32
    %c0_i32_1 = arith.constant 0 : i32
    return %c0_i32, %c0_i32_0 : i32, i32
  }
  func.func @transform_3(%arg0: i32) -> (i32, i32) {
    %c0_i32 = arith.constant 0 : i32
    %c0_i32_0 = arith.constant 0 : i32
    return %arg0, %c0_i32 : i32, i32
  }
}

module attributes {stable_mosaic.version = 11 : i64} {
  func.func @_matmul_stats_kernel(%arg0: i32, %arg1: memref<32x56xf32, #tpu.memory_space<vmem>>, %arg2: memref<56x128xf32, #tpu.memory_space<vmem>>, %arg3: memref<32x128xf32, #tpu.memory_space<vmem>>, %arg4: memref<1x2x128xf32, #tpu.memory_space<vmem>>) attributes {dimension_semantics = [#tpu.dimension_semantics<parallel>], iteration_bounds = array<i64: 2>, scalar_prefetch = 0 : i64, scratch_operands = 0 : i64, tpu.core_type = #tpu.core_type<tc>, window_params = [{transform_indices = @transform_0, window_bounds = array<i64: 32, 56>}, {pipeline_mode = #tpu.pipeline_mode<synchronous>, transform_indices = @transform_1, window_bounds = array<i64: 56, 128>}, {transform_indices = @transform_2, window_bounds = array<i64: 32, 128>}, {transform_indices = @transform_3, window_bounds = array<i64: 1, 2, 128>}]} {
    %c0 = arith.constant 0 : index
    %c0_0 = arith.constant 0 : index
    %0 = vector.load %arg1[%c0, %c0_0] : memref<32x56xf32, #tpu.memory_space<vmem>>, vector<32x56xf32>
    %c0_1 = arith.constant 0 : index
    %c0_2 = arith.constant 0 : index
    %1 = vector.load %arg2[%c0_1, %c0_2] : memref<56x128xf32, #tpu.memory_space<vmem>>, vector<56x128xf32>
    %cst = arith.constant dense<0.000000e+00> : vector<32x128xf32>
    %2 = tpu.matmul %0, %1, %cst {dimension_numbers = #tpu.dot_dimension_numbers<[1], [0], [0], [1], [0, 0, 1, 1], [], []>} : vector<32x56xf32>, vector<56x128xf32>, vector<32x128xf32> -> vector<32x128xf32>
    %c0_3 = arith.constant 0 : index
    %c0_4 = arith.constant 0 : index
    %3 = vector.load %arg3[%c0_3, %c0_4] : memref<32x128xf32, #tpu.memory_space<vmem>>, vector<32x128xf32>
    tpu.vector_store %arg3[%c0_3, %c0_4], %2 {strides = array<i32>} : memref<32x128xf32, #tpu.memory_space<vmem>>, vector<32x128xf32>,
    %cst_5 = arith.constant dense<0.000000e+00> : vector<128xf32>
    %4 = vector.multi_reduction <add>, %2, %cst_5 [0] : vector<32x128xf32> to vector<128xf32>
    %5 = vector.shape_cast %4 : vector<128xf32> to vector<1x128xf32>
    %6 = arith.mulf %2, %2 : vector<32x128xf32>
    %cst_6 = arith.constant dense<0.000000e+00> : vector<128xf32>
    %7 = vector.multi_reduction <add>, %6, %cst_6 [0] : vector<32x128xf32> to vector<128xf32>
    %8 = vector.shape_cast %7 : vector<128xf32> to vector<1x128xf32>
    %9 = tpu.concatenate %5, %8 in 0 : vector<1x128xf32>, vector<1x128xf32> -> vector<2x128xf32>
    %10 = vector.shape_cast %9 : vector<2x128xf32> to vector<1x2x128xf32>
    %c0_7 = arith.constant 0 : index
    %c0_8 = arith.constant 0 : index
    %c0_9 = arith.constant 0 : index
    %11 = vector.load %arg4[%c0_7, %c0_8, %c0_9] : memref<1x2x128xf32, #tpu.memory_space<vmem>>, vector<1x2x128xf32>
    tpu.vector_store %arg4[%c0_7, %c0_8, %c0_9], %10 {strides = array<i32>} : memref<1x2x128xf32, #tpu.memory_space<vmem>>, vector<1x2x128xf32>,
    return
  }
  func.func @transform_0(%arg0: i32) -> (i32, i32) {
    %c0_i32 = arith.constant 0 : i32
    %c0_i32_0 = arith.constant 0 : i32
    return %arg0, %c0_i32 : i32, i32
  }
  func.func @transform_1(%arg0: i32) -> (i32, i32) {
    %c0_i32 = arith.constant 0 : i32
    %c0_i32_0 = arith.constant 0 : i32
    %c0_i32_1 = arith.constant 0 : i32
    return %c0_i32, %c0_i32_0 : i32, i32
  }
  func.func @transform_2(%arg0: i32) -> (i32, i32) {
    %c0_i32 = arith.constant 0 : i32
    %c0_i32_0 = arith.constant 0 : i32
    return %arg0, %c0_i32 : i32, i32
  }
  func.func @transform_3(%arg0: i32) -> (i32, i32, i32) {
    %c0_i32 = arith.constant 0 : i32
    %c0_i32_0 = arith.constant 0 : i32
    %c0_i32_1 = arith.constant 0 : i32
    return %arg0, %c0_i32, %c0_i32_0 : i32, i32, i32
  }
}

</mosaic_0001>

<bundles_post_ra>
// kernel: down_block_forward.6
= control target key start
LH: loop header
LB: loop body
LE: loop exit
PB: predicated region body
PF: predicated region fallthrough
CT: control target
= control target key end

     0   :  { %s420_s12 = smov 0   ;;  %s457_s0 = inlined_call_operand.vmem [shape: f32[64,28], index: 0, kind: input, shape index: {}]   ;;  %s458_s1 = inlined_call_operand.vmem [shape: f32[28,128], index: 1, kind: input, shape index: {}]   ;;  %s459_s2 = inlined_call_operand.vmem [shape: f32[64,128], index: 2, kind: output, shape index: {0}]   ;;  %s460_s3 = inlined_call_operand.vmem [shape: f32[2,2,128], index: 3, kind: output, shape index: {1}]  }
   0x1 LB: > { %s426_s13 = sadd.s32 4294967295, %s398_s12   ;;  %p359_p0 = scmp.ge.s32.totalorder %s398_s12, 1  ;;  %s398_s12 = sphi %s420_s12, %s14_s12  }
   0x2   : > { %p141_p1 = scmp.lt.s32.totalorder %s398_s12, 3 }
   0x4   : > { %p142_p2 = pnand %p359_p0, %p141_p1 }
   0x5   : > { %s360_s18 = sshll.u32 (!%p142_p2), %s426_s13, 2  ;;  %p181_p4 = scmp.lt.s32.totalorder (!%p142_p2), %s426_s13, 1 }
   0x6   : > { %145 = sbr.rel (%p142_p2) target bundleno = 171 (0xab), region = 28  ;;  %p170_p3 = scmp.lt.s32.totalorder (!%p142_p2), %s360_s18, 7 }
   0xb   : > { %v192_v0 = vld [vmem:[%s458_s1 + $0x18] sm:$0xf]  ;;  %vm206_vm0 = vcmask 1043456   ;;  %v191_v1 = vld [vmem:[%s458_s1 + $0x10] sm:$0xff]  ;;  %v190_v2 = vld [vmem:[%s458_s1 + $0x8] sm:$0xff]  ;;  %s462_s18 = smov (!%p170_p3, %s360_s18), 7 }
   0xc   : > { %373 = vmatpush.msk.msra.mxu2 %vm206_vm0, %v192_v0  ;;  %374 = vmatpush.msk.msra.mxu3 %vm206_vm0, %v192_v0  ;;  %v189_v3 = vld [vmem:[%s458_s1] sm:$0xff]  ;;  %s361_s23 = sshll.u32 %s462_s18, 3  ;;  %vm193_vm1 = vcmask 228352   ;;  %s464_s13 = smov (!%p181_p4, %s426_s13), 1  ;;  %vm265_vm2 = vcmask 1040384  }
   0xd   : > { %365 = vmatpush.msk.msra.mxu0 %vm206_vm0, %v192_v0  ;;  %372 = vmatpush.msk.msra.mxu1 %vm206_vm0, %v192_v0  ;;  %s173_s26 = scalar_lea.vmem %s457_s0, %s361_s23  ;;  %s179_s29 = scalar_lea.vmem %s459_s2, %s361_s23 }
   0xe   : > { %376 = vmatpush.msra.mxu2 %v191_v1  ;;  %377 = vmatpush.msra.mxu3 %v191_v1  ;;  %v187_v4 = vld [vmem:[%s173_s26 + $0x10] sm:$0xff]  ;;  %v188_v5 = vld [vmem:[%s173_s26 + $0x18] sm:$0xff]  ;;  %v185_v6 = vld [vmem:[%s173_s26] sm:$0xff]  ;;  %s364_s30 = sshll.u32 %s464_s13, 1 }
   0xf   : > { %223 = vmatpush.msra.mxu0 %v191_v1  ;;  %375 = vmatpush.msra.mxu1 %v191_v1  ;;  %v186_v7 = vld [vmem:[%s173_s26 + $0x8] sm:$0xff]  ;;  %s184_s6 = scalar_lea.vmem %s460_s3, %s364_s30 }
  0x10   : > { %379 = vmatpush.msra.mxu2 %v190_v2  ;;  %380 = vmatpush.msra.mxu3 %v190_v2 }
  0x11   : > { %224 = vmatpush.msra.mxu0 %v190_v2  ;;  %378 = vmatpush.msra.mxu1 %v190_v2 }
  0x12   : > { %382 = vmatpush.msra.mxu2 %v189_v3  ;;  %383 = vmatpush.msra.mxu3 %v189_v3 }
  0x13   : > { %368 = vmatmul.msk.f32.vlgmr.msra.gmra.mxu2 %vm193_vm1, %v187_v4  ;;  %225 = vmatpush.msra.mxu0 %v189_v3 }
  0x14   : > { %369 = vmatmul.msk.f32.vlgmr.msra.gmra.mxu3 %vm193_vm1, %v188_v5  ;;  %381 = vmatpush.msra.mxu1 %v189_v3 }
  0x15   : > { %366 = vmatmul.msk.f32.vlgmr.msra.gmra.mxu0 %vm193_vm1, %v185_v6  ;;  %367 = vmatmul.msk.f32.vlgmr.msra.gmra.mxu1 %vm193_vm1, %v186_v7 }
  0x92   : > { %v227_v8 = vpop.f32.mrf.mxu0  ;;  %v230_v9 = vpop.f32.mrf.mxu1 }
  0x93   : > { %239 = vst [vmem:[%s179_s29] sm:$0xff] %v227_v8  ;;  %v252_v10 = vmul.f32 %v227_v8, %v227_v8  ;;  %v243_v11 = vadd.f32 %v230_v9, %v227_v8  ;;  %v253_v12 = vmul.f32 %v230_v9, %v230_v9 }
  0x94   : > { %240 = vst [vmem:[%s179_s29 + $0x8] sm:$0xff] %v230_v9 }
  0x95   : > { %v256_v13 = vadd.f32 %v253_v12, %v252_v10 }
  0x96   : > { %v233_v14 = vpop.f32.mrf.mxu2 }
  0x97   : > { %241 = vst [vmem:[%s179_s29 + $0x10] sm:$0xff] %v233_v14  ;;  %v244_v15 = vadd.f32 %v243_v11, %v233_v14  ;;  %v254_v16 = vmul.f32 %v233_v14, %v233_v14  ;;  %v236_v17 = vpop.f32.mrf.mxu3 }
  0x98   : > { %242 = vst [vmem:[%s179_s29 + $0x18] sm:$0xff] %v236_v17  ;;  %v255_v18 = vmul.f32 %v236_v17, %v236_v17 }
  0x99   : > { %v257_v19 = vadd.f32 %v256_v13, %v254_v16  ;;  %v245_v20 = vadd.f32 %v244_v15, %v236_v17 }
  0x9b   : > { %v246_v21 = vrot.slane %v245_v20, 4  ;;  %v258_v22 = vadd.f32 %v257_v19, %v255_v18 }
  0x9d   : > { %v247_v23 = vadd.f32 %v246_v21, %v245_v20  ;;  %v259_v24 = vrot.slane %v258_v22, 4 }
  0x9f   : > { %v248_v25 = vrot.slane %v247_v23, 2  ;;  %v260_v26 = vadd.f32 %v259_v24, %v258_v22 }
  0xa1   : > { %v249_v27 = vadd.f32 %v248_v25, %v247_v23  ;;  %v261_v28 = vrot.slane %v260_v26, 2 }
  0xa3   : > { %v250_v29 = vrot.slane %v249_v27, 1  ;;  %v262_v30 = vadd.f32 %v261_v28, %v260_v26 }
  0xa5   : > { %v263_v31 = vrot.slane %v262_v30, 1  ;;  %v251_v32 = vadd.f32 %v250_v29, %v249_v27 }
  0xa7   : > { %v264_v33 = vadd.f32 %v263_v31, %v262_v30 }
  0xa9   : > { %v266_v34 = vsel %vm265_vm2, %v251_v32, %v264_v33 }
  0xaa   : > { %267 = vst [vmem:[%s184_s6] sm:$0x3] %v266_v34 }
  0xab PF: > { %s14_s12 = sadd.s32 1, %s398_s12  }
  0xac   : > { %p11_p5 = scmp.ge.s32.totalorder %s14_s12, 4  }
  0xae   :  { %13 = sbr.rel (!%p11_p5) target bundleno = 1 (0x1), region = 70 }

// kernel: down_block_forward.5
= control target key start
LH: loop header
LB: loop body
LE: loop exit
PB: predicated region body
PF: predicated region fallthrough
CT: control target
= control target key end

     0   :  { %s321_s9 = smov 0   ;;  %s350_s0 = inlined_call_operand.vmem [shape: f32[64,28], index: 0, kind: input, shape index: {}]   ;;  %s351_s1 = inlined_call_operand.vmem [shape: f32[28,4], index: 1, kind: input, shape index: {}]   ;;  %s352_s2 = inlined_call_operand.vmem [shape: f32[64,4], index: 2, kind: output, shape index: {}]  }
   0x1 LB: > { %s262_s10 = sadd.s32 4294967295, %s304_s9   ;;  %p266_p0 = scmp.ge.s32.totalorder %s304_s9, 1  ;;  %s304_s9 = sphi %s321_s9, %s12_s9  }
   0x2   : > { %p113_p1 = scmp.lt.s32.totalorder %s304_s9, 3 }
   0x4   : > { %p114_p2 = pnand %p266_p0, %p113_p1 }
   0x5   : > { %s267_s15 = sshll.u32 (!%p114_p2), %s262_s10, 2 }
   0x6   : > { %117 = sbr.rel (%p114_p2) target bundleno = 153 (0x99), region = 28  ;;  %p136_p3 = scmp.lt.s32.totalorder (!%p114_p2), %s267_s15, 7 }
   0xb   : > { %v154_v0 = vld [vmem:[%s351_s1 + $0x18] sm:$0xf]  ;;  %vm168_vm0 = vcmask 1043456   ;;  %v153_v1 = vld [vmem:[%s351_s1 + $0x10] sm:$0xff]  ;;  %v152_v2 = vld [vmem:[%s351_s1 + $0x8] sm:$0xff]  ;;  %s354_s15 = smov (!%p136_p3, %s267_s15), 7 }
   0xc   : > { %279 = vmatpush.msk.msra.mxu2 %vm168_vm0, %v154_v0  ;;  %280 = vmatpush.msk.msra.mxu3 %vm168_vm0, %v154_v0  ;;  %v151_v3 = vld [vmem:[%s351_s1] sm:$0xff]  ;;  %s268_s20 = sshll.u32 %s354_s15, 3  ;;  %vm155_vm1 = vcmask 228352   ;;  %vm201_vm2 = vcmask 31744  }
   0xd   : > { %271 = vmatpush.msk.msra.mxu0 %vm168_vm0, %v154_v0  ;;  %278 = vmatpush.msk.msra.mxu1 %vm168_vm0, %v154_v0  ;;  %s139_s23 = scalar_lea.vmem %s350_s0, %s268_s20  ;;  %s145_s26 = scalar_lea.vmem %s352_s2, %s268_s20 }
   0xe   : > { %282 = vmatpush.msra.mxu2 %v153_v1  ;;  %283 = vmatpush.msra.mxu3 %v153_v1  ;;  %v149_v4 = vld [vmem:[%s139_s23 + $0x10] sm:$0xff]  ;;  %v150_v5 = vld [vmem:[%s139_s23 + $0x18] sm:$0xff]  ;;  %v147_v6 = vld [vmem:[%s139_s23] sm:$0xff] }
   0xf   : > { %185 = vmatpush.msra.mxu0 %v153_v1  ;;  %281 = vmatpush.msra.mxu1 %v153_v1  ;;  %v148_v7 = vld [vmem:[%s139_s23 + $0x8] sm:$0xff] }
  0x10   : > { %285 = vmatpush.msra.mxu2 %v152_v2  ;;  %286 = vmatpush.msra.mxu3 %v152_v2 }
  0x11   : > { %186 = vmatpush.msra.mxu0 %v152_v2  ;;  %284 = vmatpush.msra.mxu1 %v152_v2 }
  0x12   : > { %288 = vmatpush.msra.mxu2 %v151_v3  ;;  %289 = vmatpush.msra.mxu3 %v151_v3 }
  0x13   : > { %274 = vmatmul.msk.f32.vlgmr.msra.gmra.mxu2 %vm155_vm1, %v149_v4  ;;  %275 = vmatmul.msk.f32.vlgmr.msra.gmra.mxu3 %vm155_vm1, %v150_v5 }
  0x14   : > { %187 = vmatpush.msra.mxu0 %v151_v3  ;;  %287 = vmatpush.msra.mxu1 %v151_v3 }
  0x15   : > { %272 = vmatmul.msk.f32.vlgmr.msra.gmra.mxu0 %vm155_vm1, %v147_v6  ;;  %273 = vmatmul.msk.f32.vlgmr.msra.gmra.mxu1 %vm155_vm1, %v148_v7 }
  0x92   : > { %v189_v8 = vpop.f32.mrf.mxu0  ;;  %v192_v9 = vpop.f32.mrf.mxu1 }
  0x93   : > { %202 = vst.msk [vmem:[%s145_s26] sm:$0xff] %vm201_vm2, %v189_v8 }
  0x94   : > { %203 = vst.msk [vmem:[%s145_s26 + $0x8] sm:$0xff] %vm201_vm2, %v192_v9 }
  0x96   : > { %v195_v10 = vpop.f32.mrf.mxu2  ;;  %v198_v11 = vpop.f32.mrf.mxu3 }
  0x97   : > { %204 = vst.msk [vmem:[%s145_s26 + $0x10] sm:$0xff] %vm201_vm2, %v195_v10 }
  0x98   : > { %205 = vst.msk [vmem:[%s145_s26 + $0x18] sm:$0xff] %vm201_vm2, %v198_v11 }
  0x99 PF: > { %s12_s9 = sadd.s32 1, %s304_s9  }
  0x9a   : > { %p9_p4 = scmp.ge.s32.totalorder %s12_s9, 4  }
  0x9c   :  { %11 = sbr.rel (!%p9_p4) target bundleno = 1 (0x1), region = 58 }

// kernel: down_block_forward.7
= control target key start
LH: loop header
LB: loop body
LE: loop exit
PB: predicated region body
PF: predicated region fallthrough
CT: control target
= control target key end

     0   :  { %s311_s12 = smov 0   ;;  %s334_s0 = inlined_call_operand.vmem [shape: f32[64,128], index: 0, kind: input, shape index: {}]   ;;  %s335_s1 = inlined_call_operand.vmem [shape: f32[1,128], index: 1, kind: input, shape index: {}]   ;;  %s336_s2 = inlined_call_operand.vmem [shape: f32[1,128], index: 2, kind: input, shape index: {}]   ;;  %s337_s3 = inlined_call_operand.vmem [shape: f32[64,128], index: 3, kind: output, shape index: {}]  }
   0x1 LB: > { %s262_s13 = sadd.s32 4294967295, %s289_s12   ;;  %p266_p0 = scmp.ge.s32.totalorder %s289_s12, 1  ;;  %s289_s12 = sphi %s311_s12, %s13_s12  }
   0x2   : > { %p138_p1 = scmp.lt.s32.totalorder %s289_s12, 3 }
   0x4   : > { %p139_p2 = pnand %p266_p0, %p138_p1 }
   0x5   : > { %s267_s14 = sshll.u32 (!%p139_p2), %s262_s13, 2 }
   0x6   : > { %142 = sbr.rel (%p139_p2) target bundleno = 27 (0x1b), region = 32  ;;  %p163_p3 = scmp.lt.s32.totalorder (!%p139_p2), %s267_s14, 7 }
   0xb   : > { %s339_s14 = smov (!%p163_p3, %s267_s14), 7  ;;  %v281_v0 = vld [vmem:[%s335_s1] ss:$0 sm:$0xff] }
   0xc   : > { %s268_s17 = sshll.u32 %s339_s14, 3  ;;  %v282_v1 = vld [vmem:[%s336_s2] ss:$0 sm:$0xff] }
   0xd   : > { %s166_s20 = scalar_lea.vmem %s334_s0, %s268_s17  ;;  %s172_s25 = scalar_lea.vmem %s337_s3, %s268_s17 }
   0xe   : > { %v174_v2 = vld [vmem:[%s166_s20] sm:$0xff]  ;;  %v175_v3 = vld [vmem:[%s166_s20 + $0x8] sm:$0xff]  ;;  %v176_v4 = vld [vmem:[%s166_s20 + $0x10] sm:$0xff] }
   0xf   : > { %v182_v5 = vmul.f32 %v281_v0, %v174_v2  ;;  %v183_v6 = vmul.f32 %v281_v0, %v175_v3  ;;  %v184_v7 = vmul.f32 %v281_v0, %v176_v4  ;;  %v177_v8 = vld [vmem:[%s166_s20 + $0x18] sm:$0xff] }
  0x10   : > { %v185_v9 = vmul.f32 %v281_v0, %v177_v8 }
  0x11   : > { %v190_v10 = vadd.f32 %v282_v1, %v182_v5  ;;  %v191_v11 = vadd.f32 %v282_v1, %v183_v6  ;;  %v192_v12 = vadd.f32 %v282_v1, %v184_v7 }
  0x12   : > { %v193_v13 = vadd.f32 %v282_v1, %v185_v9 }
  0x13   : > { %v194_v14 = vmul.f32 0.2, %v190_v10  ;;  %v195_v15 = vmul.f32 0.2, %v191_v11  ;;  %v196_v16 = vmul.f32 0.2, %v192_v12 }
  0x14   : > { %v197_v17 = vmul.f32 0.2, %v193_v13 }
  0x15   : > { %v198_v18 = vmax.f32 %v190_v10, %v194_v14  ;;  %v199_v19 = vmax.f32 %v191_v11, %v195_v15  ;;  %v200_v20 = vmax.f32 %v192_v12, %v196_v16 }
  0x16   : > { %v201_v21 = vmax.f32 %v193_v13, %v197_v17 }
  0x17   : > { %202 = vst [vmem:[%s172_s25] sm:$0xff] %v198_v18 }
  0x18   : > { %203 = vst [vmem:[%s172_s25 + $0x8] sm:$0xff] %v199_v19 }
  0x19   : > { %204 = vst [vmem:[%s172_s25 + $0x10] sm:$0xff] %v200_v20 }
  0x1a   : > { %205 = vst [vmem:[%s172_s25 + $0x18] sm:$0xff] %v201_v21 }
  0x1b PF: > { %s13_s12 = sadd.s32 1, %s289_s12  }
  0x1c   : > { %p10_p4 = scmp.ge.s32.totalorder %s13_s12, 4  }
  0x1e   :  { %12 = sbr.rel (!%p10_p4) target bundleno = 1 (0x1), region = 62 }

// kernel: down_block_forward.8
= control target key start
LH: loop header
LB: loop body
LE: loop exit
PB: predicated region body
PF: predicated region fallthrough
CT: control target
= control target key end

     0   :  { %s427_s12 = smov 0   ;;  %s480_s0 = inlined_call_operand.vmem [shape: f32[64,56], index: 0, kind: input, shape index: {}]   ;;  %s481_s1 = inlined_call_operand.vmem [shape: f32[56,128], index: 1, kind: input, shape index: {}]   ;;  %s482_s2 = inlined_call_operand.vmem [shape: f32[64,128], index: 2, kind: output, shape index: {0}]   ;;  %s483_s3 = inlined_call_operand.vmem [shape: f32[2,2,128], index: 3, kind: output, shape index: {1}]  }
   0x1 LB: > { %s433_s13 = sadd.s32 4294967295, %s405_s12   ;;  %p358_p0 = scmp.ge.s32.totalorder %s405_s12, 1  ;;  %s405_s12 = sphi %s427_s12, %s14_s12  }
   0x2   : > { %p141_p1 = scmp.lt.s32.totalorder %s405_s12, 3 }
   0x4   : > { %p142_p2 = pnand %p358_p0, %p141_p1 }
   0x5   : > { %s359_s18 = sshll.u32 (!%p142_p2), %s433_s13, 2  ;;  %p181_p4 = scmp.lt.s32.totalorder (!%p142_p2), %s433_s13, 1 }
   0x6   : > { %145 = sbr.rel (%p142_p2) target bundleno = 177 (0xb1), region = 28  ;;  %p170_p3 = scmp.lt.s32.totalorder (!%p142_p2), %s359_s18, 7 }
   0xb   : > { %v195_v0 = vld [vmem:[%s481_s1 + $0x30] sm:$0xff]  ;;  %v194_v1 = vld [vmem:[%s481_s1 + $0x28] sm:$0xff]  ;;  %v193_v2 = vld [vmem:[%s481_s1 + $0x20] sm:$0xff]  ;;  %s485_s18 = smov (!%p170_p3, %s359_s18), 7  ;;  %vm196_vm0 = vcmask 457728   ;;  %s487_s13 = smov (!%p181_p4, %s433_s13), 1 }
   0xc   : > { %371 = vmatpush.msra.mxu2 %v195_v0  ;;  %372 = vmatpush.msra.mxu3 %v195_v0  ;;  %v192_v3 = vld [vmem:[%s481_s1 + $0x18] sm:$0xff]  ;;  %s360_s23 = sshll.u32 %s485_s18, 3  ;;  %v191_v4 = vld [vmem:[%s481_s1 + $0x10] sm:$0xff]  ;;  %v190_v5 = vld [vmem:[%s481_s1 + $0x8] sm:$0xff]  ;;  %s363_s9 = sshll.u32 %s487_s13, 1  ;;  %vm264_vm1 = vcmask 1040384  }
   0xd   : > { %218 = vmatpush.msra.mxu0 %v195_v0  ;;  %370 = vmatpush.msra.mxu1 %v195_v0  ;;  %s173_s30 = scalar_lea.vmem %s480_s0, %s360_s23  ;;  %v189_v6 = vld [vmem:[%s481_s1] sm:$0xff]  ;;  %s179_s8 = scalar_lea.vmem %s482_s2, %s360_s23 }
   0xe   : > { %374 = vmatpush.msra.mxu2 %v194_v1  ;;  %375 = vmatpush.msra.mxu3 %v194_v1  ;;  %v187_v7 = vld [vmem:[%s173_s30 + $0x10] sm:$0xff]  ;;  %v188_v8 = vld [vmem:[%s173_s30 + $0x18] sm:$0xff]  ;;  %v185_v9 = vld [vmem:[%s173_s30] sm:$0xff]  ;;  %s184_s14 = scalar_lea.vmem %s483_s3, %s363_s9 }
   0xf   : > { %219 = vmatpush.msra.mxu0 %v194_v1  ;;  %373 = vmatpush.msra.mxu1 %v194_v1  ;;  %v186_v10 = vld [vmem:[%s173_s30 + $0x8] sm:$0xff] }
  0x10   : > { %377 = vmatpush.msra.mxu2 %v193_v2  ;;  %378 = vmatpush.msra.mxu3 %v193_v2 }
  0x11   : > { %220 = vmatpush.msra.mxu0 %v193_v2  ;;  %376 = vmatpush.msra.mxu1 %v193_v2 }
  0x12   : > { %380 = vmatpush.msra.mxu2 %v192_v3  ;;  %381 = vmatpush.msra.mxu3 %v192_v3 }
  0x13   : > { %221 = vmatpush.msra.mxu0 %v192_v3  ;;  %379 = vmatpush.msra.mxu1 %v192_v3 }
  0x14   : > { %383 = vmatpush.msra.mxu2 %v191_v4  ;;  %384 = vmatpush.msra.mxu3 %v191_v4 }
  0x15   : > { %222 = vmatpush.msra.mxu0 %v191_v4  ;;  %382 = vmatpush.msra.mxu1 %v191_v4 }
  0x16   : > { %386 = vmatpush.msra.mxu2 %v190_v5  ;;  %387 = vmatpush.msra.mxu3 %v190_v5 }
  0x17   : > { %223 = vmatpush.msra.mxu0 %v190_v5  ;;  %385 = vmatpush.msra.mxu1 %v190_v5 }
  0x18   : > { %389 = vmatpush.msra.mxu2 %v189_v6  ;;  %390 = vmatpush.msra.mxu3 %v189_v6 }
  0x19   : > { %366 = vmatmul.msk.f32.vlgmr.msra.gmra.mxu2 %vm196_vm0, %v187_v7  ;;  %224 = vmatpush.msra.mxu0 %v189_v6 }
  0x1a   : > { %367 = vmatmul.msk.f32.vlgmr.msra.gmra.mxu3 %vm196_vm0, %v188_v8  ;;  %388 = vmatpush.msra.mxu1 %v189_v6 }
  0x1b   : > { %364 = vmatmul.msk.f32.vlgmr.msra.gmra.mxu0 %vm196_vm0, %v185_v9  ;;  %365 = vmatmul.msk.f32.vlgmr.msra.gmra.mxu1 %vm196_vm0, %v186_v10 }
  0x98   : > { %v226_v11 = vpop.f32.mrf.mxu0  ;;  %v229_v12 = vpop.f32.mrf.mxu1 }
  0x99   : > { %238 = vst [vmem:[%s179_s8] sm:$0xff] %v226_v11  ;;  %v251_v13 = vmul.f32 %v226_v11, %v226_v11  ;;  %v242_v14 = vadd.f32 %v229_v12, %v226_v11  ;;  %v252_v15 = vmul.f32 %v229_v12, %v229_v12 }
  0x9a   : > { %239 = vst [vmem:[%s179_s8 + $0x8] sm:$0xff] %v229_v12 }
  0x9b   : > { %v255_v16 = vadd.f32 %v252_v15, %v251_v13 }
  0x9c   : > { %v232_v17 = vpop.f32.mrf.mxu2 }
  0x9d   : > { %240 = vst [vmem:[%s179_s8 + $0x10] sm:$0xff] %v232_v17  ;;  %v243_v18 = vadd.f32 %v242_v14, %v232_v17  ;;  %v253_v19 = vmul.f32 %v232_v17, %v232_v17  ;;  %v235_v20 = vpop.f32.mrf.mxu3 }
  0x9e   : > { %241 = vst [vmem:[%s179_s8 + $0x18] sm:$0xff] %v235_v20  ;;  %v254_v21 = vmul.f32 %v235_v20, %v235_v20 }
  0x9f   : > { %v256_v22 = vadd.f32 %v255_v16, %v253_v19  ;;  %v244_v23 = vadd.f32 %v243_v18, %v235_v20 }
  0xa1   : > { %v245_v24 = vrot.slane %v244_v23, 4  ;;  %v257_v25 = vadd.f32 %v256_v22, %v254_v21 }
  0xa3   : > { %v246_v26 = vadd.f32 %v245_v24, %v244_v23  ;;  %v258_v27 = vrot.slane %v257_v25, 4 }
  0xa5   : > { %v247_v28 = vrot.slane %v246_v26, 2  ;;  %v259_v29 = vadd.f32 %v258_v27, %v257_v25 }
  0xa7   : > { %v248_v30 = vadd.f32 %v247_v28, %v246_v26  ;;  %v260_v31 = vrot.slane %v259_v29, 2 }
  0xa9   : > { %v249_v32 = vrot.slane %v248_v30, 1  ;;  %v261_v33 = vadd.f32 %v260_v31, %v259_v29 }
  0xab   : > { %v262_v34 = vrot.slane %v261_v33, 1  ;;  %v250_v35 = vadd.f32 %v249_v32, %v248_v30 }
  0xad   : > { %v263_v36 = vadd.f32 %v262_v34, %v261_v33 }
  0xaf   : > { %v265_v37 = vsel %vm264_vm1, %v250_v35, %v263_v36 }
  0xb0   : > { %266 = vst [vmem:[%s184_s14] sm:$0x3] %v265_v37 }
  0xb1 PF: > { %s14_s12 = sadd.s32 1, %s405_s12  }
  0xb2   : > { %p11_p5 = scmp.ge.s32.totalorder %s14_s12, 4  }
  0xb4   :  { %13 = sbr.rel (!%p11_p5) target bundleno = 1 (0x1), region = 70 }

</bundles_post_ra>
